<compile_context>
chip_gen: v7x
topology: tpu7x:2x2x1
jax: 0.10.0
libtpu: 0.0.40
codegen_flags: <defaults>
</compile_context>

<pallas_src>
import jax
import jax.numpy as jnp
import numpy as np
from jax.experimental import pallas as pl
from jax.experimental.pallas import tpu as pltpu

EPS = 1e-5
LANE = 128                       # TPU lane width; channels padded to multiples.
STAT_ROWS = 8                    # stats tile rows: row 0 = sum, row 1 = sumsq.
VMEM_LIMIT_BYTES = 32 * 1024 * 1024   # fits every generation (v7x: 64 MiB phys).


# --------------------------------------------------------------------------
# small host-side helpers
# --------------------------------------------------------------------------
def _round_up(x, m):
    return (x + m - 1) // m * m


def _pad_axis(a, axis, new_size):
    pad = [(0, 0)] * a.ndim
    pad[axis] = (0, new_size - a.shape[axis])
    return jnp.pad(a, pad)


def _row_block(r, target=512):
    """Largest multiple of 8 that divides r and is <= target."""
    best = 8
    t = 8
    while t <= min(r, target):
        if r % t == 0:
            best = t
        t += 8
    return best


def _stats_to_scale_shift(st, count, gamma_p, beta_p):
    """Global BN scale/shift from per-block partial (sum, sumsq) tiles."""
    s = jnp.sum(st[:, 0, :], axis=0)
    sq = jnp.sum(st[:, 1, :], axis=0)
    mean = s / count
    var = sq / count - mean * mean            # biased var (PyTorch training BN)
    scale = gamma_p * jax.lax.rsqrt(var + EPS)
    shift = beta_p - mean * scale
    return (scale.reshape(1, -1).astype(jnp.float32),
            shift.reshape(1, -1).astype(jnp.float32))


def _stats_tile(u):
    """(STAT_ROWS, C) tile: row 0 = column sums, row 1 = column sums of squares."""
    c = u.shape[1]
    s = jnp.sum(u, axis=0, keepdims=True)
    sq = jnp.sum(u * u, axis=0, keepdims=True)
    return jnp.concatenate(
        [s, sq, jnp.zeros((STAT_ROWS - 2, c), jnp.float32)], axis=0)


# --------------------------------------------------------------------------
# kernels
# --------------------------------------------------------------------------
def _conv1x1_stats_kernel(x_ref, w_ref, u_ref, st_ref):
    """u = x @ w (bf16 MXU operands, f32 accumulate) + per-block BN partials."""
    xb = x_ref[...].astype(jnp.bfloat16)
    u = jnp.dot(xb, w_ref[...], preferred_element_type=jnp.float32)
    u_ref[...] = u
    st_ref[0] = _stats_tile(u)


def _bnrelu_conv1x1_stats_kernel(u_in_ref, scale_ref, shift_ref, w_ref,
                                 u_out_ref, st_ref):
    """o = relu(bn(u_in)); u_out = o @ w; per-block BN partials of u_out."""
    o = jnp.maximum(u_in_ref[...] * scale_ref[...] + shift_ref[...], 0.0)
    u = jnp.dot(o.astype(jnp.bfloat16), w_ref[...],
                preferred_element_type=jnp.float32)
    u_out_ref[...] = u
    st_ref[0] = _stats_tile(u)


def _bnrelu_conv3x3_stats_kernel(u1_ref, scale_ref, shift_ref, w_ref,
                                 u2_ref, st_ref, pad_ref, col_ref):
    """Per image: o1 = relu(bn1(u1)); u2 = conv3x3(o1) via padded VMEM scratch
    + im2col scratch + a single wide-K (9*C) matmul; emit BN2 partials."""
    _, h, w, c = u1_ref.shape
    sc = scale_ref[...].reshape(1, 1, 1, c)
    sh = shift_ref[...].reshape(1, 1, 1, c)
    o1 = jnp.maximum(u1_ref[...] * sc + sh, 0.0)          # (1, h, w, c) f32

    # Zero-padded scratch buffer (ref writes, no full-tensor concatenates).
    # Only the border rows strictly need the clear; a full clear per step is
    # cheap and safe under "parallel" core sharding.
    pad_ref[...] = jnp.zeros(pad_ref.shape, jnp.float32)
    zcol = jnp.zeros((h, 1, c), jnp.float32)
    pad_ref[0, 1:h + 1, :, :] = jnp.concatenate([zcol, o1[0], zcol], axis=1)

    # im2col: 9 lane-aligned copies into a (h*w, 9*c) bf16 scratch, then one
    # MXU matmul with contraction K = 9*c (instead of 9 tiny K=c matmuls).
    for dy in range(3):
        slab = pad_ref[0, dy:dy + h, :, :]                 # (h, w+2, c) load
        for dx in range(3):
            t = dy * 3 + dx
            col_ref[:, t * c:(t + 1) * c] = (
                slab[:, dx:dx + w, :].reshape(h * w, c).astype(jnp.bfloat16))

    u2 = jnp.dot(col_ref[...], w_ref[...], preferred_element_type=jnp.float32)
    u2_ref[...] = u2.reshape(1, h, w, c)
    st_ref[0] = _stats_tile(u2)


def _bn_residual_relu_kernel(u3_ref, scale_ref, shift_ref, x_ref, o_ref):
    """out = relu(bn3(u3) + x) — residual read here, not held live earlier."""
    o = u3_ref[...] * scale_ref[...] + shift_ref[...] + x_ref[...]
    o_ref[...] = jnp.maximum(o, 0.0)


# --------------------------------------------------------------------------
# pallas_call builders
# --------------------------------------------------------------------------
def _compiler_params():
    return pltpu.CompilerParams(dimension_semantics=("parallel",),
                                vmem_limit_bytes=VMEM_LIMIT_BYTES)


def _call_conv1x1(x2d, w, tr):
    r, cin = x2d.shape
    cout = w.shape[1]
    nblk = r // tr
    cost = pl.CostEstimate(
        flops=2 * r * cin * cout, transcendentals=0,
        bytes_accessed=int(x2d.size * 4 + w.size * 2 + r * cout * 4
                           + nblk * STAT_ROWS * cout * 4))
    return pl.pallas_call(
        _conv1x1_stats_kernel,
        grid=(nblk,),
        in_specs=[pl.BlockSpec((tr, cin), lambda i: (i, 0)),
                  pl.BlockSpec((cin, cout), lambda i: (0, 0))],
        out_specs=[pl.BlockSpec((tr, cout), lambda i: (i, 0)),
                   pl.BlockSpec((1, STAT_ROWS, cout), lambda i: (i, 0, 0))],
        out_shape=[jax.ShapeDtypeStruct((r, cout), jnp.float32),
                   jax.ShapeDtypeStruct((nblk, STAT_ROWS, cout), jnp.float32)],
        compiler_params=_compiler_params(),
        cost_estimate=cost,
    )(x2d, w)


def _call_bnrelu_conv1x1(u, scale, shift, w, tr):
    r, cin = u.shape
    cout = w.shape[1]
    nblk = r // tr
    cost = pl.CostEstimate(
        flops=2 * r * cin * cout + 4 * r * cin, transcendentals=0,
        bytes_accessed=int(u.size * 4 + w.size * 2 + r * cout * 4
                           + nblk * STAT_ROWS * cout * 4 + 2 * cin * 4))
    return pl.pallas_call(
        _bnrelu_conv1x1_stats_kernel,
        grid=(nblk,),
        in_specs=[pl.BlockSpec((tr, cin), lambda i: (i, 0)),
                  pl.BlockSpec((1, cin), lambda i: (0, 0)),
                  pl.BlockSpec((1, cin), lambda i: (0, 0)),
                  pl.BlockSpec((cin, cout), lambda i: (0, 0))],
        out_specs=[pl.BlockSpec((tr, cout), lambda i: (i, 0)),
                   pl.BlockSpec((1, STAT_ROWS, cout), lambda i: (i, 0, 0))],
        out_shape=[jax.ShapeDtypeStruct((r, cout), jnp.float32),
                   jax.ShapeDtypeStruct((nblk, STAT_ROWS, cout), jnp.float32)],
        compiler_params=_compiler_params(),
        cost_estimate=cost,
    )(u, scale, shift, w)


def _call_bnrelu_conv3x3(u1_4d, scale, shift, w2col):
    n, h, w, c = u1_4d.shape
    cost = pl.CostEstimate(
        flops=2 * n * h * w * (9 * c) * c + 6 * n * h * w * c,
        transcendentals=0,
        bytes_accessed=int(u1_4d.size * 4 + w2col.size * 2
                           + n * h * w * c * 4 + n * STAT_ROWS * c * 4))
    return pl.pallas_call(
        _bnrelu_conv3x3_stats_kernel,
        grid=(n,),
        in_specs=[pl.BlockSpec((1, h, w, c), lambda i: (i, 0, 0, 0)),
                  pl.BlockSpec((1, c), lambda i: (0, 0)),
                  pl.BlockSpec((1, c), lambda i: (0, 0)),
                  pl.BlockSpec((9 * c, c), lambda i: (0, 0))],
        out_specs=[pl.BlockSpec((1, h, w, c), lambda i: (i, 0, 0, 0)),
                   pl.BlockSpec((1, STAT_ROWS, c), lambda i: (i, 0, 0))],
        out_shape=[jax.ShapeDtypeStruct((n, h, w, c), jnp.float32),
                   jax.ShapeDtypeStruct((n, STAT_ROWS, c), jnp.float32)],
        scratch_shapes=[pltpu.VMEM((1, h + 2, w + 2, c), jnp.float32),
                        pltpu.VMEM((h * w, 9 * c), jnp.bfloat16)],
        compiler_params=_compiler_params(),
        cost_estimate=cost,
    )(u1_4d, scale, shift, w2col)


def _call_bn_residual_relu(u3, scale, shift, x2d, tr):
    r, c = u3.shape
    nblk = r // tr
    cost = pl.CostEstimate(
        flops=4 * r * c, transcendentals=0,
        bytes_accessed=int(u3.size * 4 + x2d.size * 4 + r * c * 4 + 2 * c * 4))
    return pl.pallas_call(
        _bn_residual_relu_kernel,
        grid=(nblk,),
        in_specs=[pl.BlockSpec((tr, c), lambda i: (i, 0)),
                  pl.BlockSpec((1, c), lambda i: (0, 0)),
                  pl.BlockSpec((1, c), lambda i: (0, 0)),
                  pl.BlockSpec((tr, c), lambda i: (i, 0))],
        out_specs=pl.BlockSpec((tr, c), lambda i: (i, 0)),
        out_shape=jax.ShapeDtypeStruct((r, c), jnp.float32),
        compiler_params=_compiler_params(),
        cost_estimate=cost,
    )(u3, scale, shift, x2d)


# --------------------------------------------------------------------------
# forward wrapper (matches PyTorch Bottleneck, stride=1, downsample=None)
# --------------------------------------------------------------------------
def bottleneck_forward(x_nchw, w1_hwio, g1, b1, w2_hwio, g2, b2,
                       w3_hwio, g3, b3, *, row_block=None):
    n, cin, h, w = x_nchw.shape
    planes = w1_hwio.shape[-1]
    cout = w3_hwio.shape[-1]
    assert cout == cin, "downsample=None requires inplanes == 4 * planes"

    cin_p = _round_up(cin, LANE)          # lane-dense channel padding
    p_p = _round_up(planes, LANE)
    cout_p = _round_up(cout, LANE)

    # NCHW -> NHWC, pad channels with zeros, flatten spatial to rows.
    x_nhwc = _pad_axis(jnp.transpose(x_nchw, (0, 2, 3, 1)).astype(jnp.float32),
                       3, cin_p)
    r = n * h * w
    x2d = x_nhwc.reshape(r, cin_p)

    if row_block is None:
        row_block = _row_block(r)
    assert r % row_block == 0 and row_block % 8 == 0

    # Weights: padded, kernel layouts, bf16 (MXU-native on v5e/v6e/v7x).
    w1 = (jnp.zeros((cin_p, p_p), jnp.float32)
          .at[:cin, :planes].set(w1_hwio.reshape(cin, planes))
          .astype(jnp.bfloat16))
    w2 = (jnp.zeros((3, 3, p_p, p_p), jnp.float32)
          .at[:, :, :planes, :planes].set(w2_hwio)
          .reshape(9 * p_p, p_p).astype(jnp.bfloat16))        # tap-major, IO
    w3 = (jnp.zeros((p_p, cout_p), jnp.float32)
          .at[:planes, :cout].set(w3_hwio.reshape(planes, cout))
          .astype(jnp.bfloat16))

    g1p = _pad_axis(g1.astype(jnp.float32), 0, p_p)
    b1p = _pad_axis(b1.astype(jnp.float32), 0, p_p)
    g2p = _pad_axis(g2.astype(jnp.float32), 0, p_p)
    b2p = _pad_axis(b2.astype(jnp.float32), 0, p_p)
    g3p = _pad_axis(g3.astype(jnp.float32), 0, cout_p)
    b3p = _pad_axis(b3.astype(jnp.float32), 0, cout_p)

    # stage 1: conv1 (1x1) + BN1 partial stats (global reduction outside)
    u1, st1 = _call_conv1x1(x2d, w1, row_block)
    sc1, sh1 = _stats_to_scale_shift(st1, r, g1p, b1p)

    # stage 2: bn1+relu -> conv2 (3x3 via padded scratch + im2col) + BN2 stats
    u2, st2 = _call_bnrelu_conv3x3(u1.reshape(n, h, w, p_p), sc1, sh1, w2)
    sc2, sh2 = _stats_to_scale_shift(st2, r, g2p, b2p)

    # stage 3: bn2+relu -> conv3 (1x1) + BN3 partial stats
    u3, st3 = _call_bnrelu_conv1x1(u2.reshape(r, p_p), sc2, sh2, w3, row_block)
    sc3, sh3 = _stats_to_scale_shift(st3, r, g3p, b3p)

    # stage 4: bn3 + residual add + relu
    out2d = _call_bn_residual_relu(u3, sc3, sh3, x2d, row_block)

    out = out2d.reshape(n, h, w, cout_p)[..., :cout]
    return jnp.transpose(out, (0, 3, 1, 2))                  # NHWC -> NCHW


# --------------------------------------------------------------------------
# pure-JAX reference (mirrors the kernel numerics: bf16 conv operands,
# f32 accumulation, f32 training-mode BN with biased variance)
# --------------------------------------------------------------------------
def _ref_bn(y, gamma, beta):
    m = jnp.mean(y, axis=(0, 1, 2))
    v = jnp.mean((y - m.reshape(1, 1, 1, -1)) ** 2, axis=(0, 1, 2))
    scale = gamma * jax.lax.rsqrt(v + EPS)
    shift = beta - m * scale
    return y * scale.reshape(1, 1, 1, -1) + shift.reshape(1, 1, 1, -1)


def _ref_forward(x_nchw, w1, g1, b1, w2, g2, b2, w3, g3, b3):
    x = jnp.transpose(x_nchw, (0, 2, 3, 1)).astype(jnp.float32)

    def conv(a, wt, pad):
        return jax.lax.conv_general_dilated(
            a.astype(jnp.bfloat16), wt.astype(jnp.bfloat16), (1, 1), pad,
            dimension_numbers=("NHWC", "HWIO", "NHWC"),
            preferred_element_type=jnp.float32)

    o = jnp.maximum(_ref_bn(conv(x, w1, "VALID"), g1, b1), 0.0)
    o = jnp.maximum(_ref_bn(conv(o, w2, "SAME"), g2, b2), 0.0)
    o = _ref_bn(conv(o, w3, "VALID"), g3, b3)
    o = jnp.maximum(o + x, 0.0)
    return jnp.transpose(o, (0, 3, 1, 2))


# --------------------------------------------------------------------------
if __name__ == "__main__":
    # Small shapes: planes = 8, inplanes = 4*planes = 32, N=2, 8x8 spatial.
    n, hs, ws = 2, 8, 8
    planes = 8
    inplanes = planes * 4           # downsample=None => inplanes == 4*planes

    key = jax.random.PRNGKey(0)
    k = jax.random.split(key, 10)

    x_nchw = jax.random.normal(k[0], (n, inplanes, hs, ws), jnp.float32)
    w1 = jax.random.normal(k[1], (1, 1, inplanes, planes), jnp.float32) * 0.1
    w2 = jax.random.normal(k[2], (3, 3, planes, planes), jnp.float32) * 0.1
    w3 = jax.random.normal(k[3], (1, 1, planes, planes * 4), jnp.float32) * 0.1
    g1 = 1.0 + 0.1 * jax.random.normal(k[4], (planes,), jnp.float32)
    b1 = 0.1 * jax.random.normal(k[5], (planes,), jnp.float32)
    g2 = 1.0 + 0.1 * jax.random.normal(k[6], (planes,), jnp.float32)
    b2 = 0.1 * jax.random.normal(k[7], (planes,), jnp.float32)
    g3 = 1.0 + 0.1 * jax.random.normal(k[8], (planes * 4,), jnp.float32)
    b3 = 0.1 * jax.random.normal(k[9], (planes * 4,), jnp.float32)

    # row_block=32 -> 4 row blocks: exercises the grid + cross-block BN stats.
    out = bottleneck_forward(x_nchw, w1, g1, b1, w2, g2, b2, w3, g3, b3,
                             row_block=32)
    out = jax.block_until_ready(out)

    ref = jax.block_until_ready(
        _ref_forward(x_nchw, w1, g1, b1, w2, g2, b2, w3, g3, b3))

    assert out.shape == (n, planes * 4, hs, ws)
    np.testing.assert_allclose(np.asarray(out), np.asarray(ref),
                               rtol=2e-3, atol=2e-3)
    print("KERNEL_OK")
</pallas_src>

<mosaic_0001>
module attributes {stable_mosaic.version = 11 : i64} {
  func.func @_conv1x1_stats_kernel(%arg0: i32, %arg1: memref<32x128xf32, #tpu.memory_space<vmem>>, %arg2: memref<128x128xbf16, #tpu.memory_space<vmem>>, %arg3: memref<32x128xf32, #tpu.memory_space<vmem>>, %arg4: memref<1x8x128xf32, #tpu.memory_space<vmem>>) attributes {dimension_semantics = [#tpu.dimension_semantics<parallel>], iteration_bounds = array<i64: 4>, scalar_prefetch = 0 : i64, scratch_operands = 0 : i64, tpu.core_type = #tpu.core_type<tc>, window_params = [{transform_indices = @transform_0, window_bounds = array<i64: 32, 128>}, {pipeline_mode = #tpu.pipeline_mode<synchronous>, transform_indices = @transform_1, window_bounds = array<i64: 128, 128>}, {transform_indices = @transform_2, window_bounds = array<i64: 32, 128>}, {transform_indices = @transform_3, window_bounds = array<i64: 1, 8, 128>}]} {
    %c0 = arith.constant 0 : index
    %c0_0 = arith.constant 0 : index
    %0 = vector.load %arg1[%c0, %c0_0] : memref<32x128xf32, #tpu.memory_space<vmem>>, vector<32x128xf32>
    %1 = arith.truncf %0 : vector<32x128xf32> to vector<32x128xbf16>
    %c0_1 = arith.constant 0 : index
    %c0_2 = arith.constant 0 : index
    %2 = vector.load %arg2[%c0_1, %c0_2] : memref<128x128xbf16, #tpu.memory_space<vmem>>, vector<128x128xbf16>
    %cst = arith.constant dense<0.000000e+00> : vector<32x128xf32>
    %3 = tpu.matmul %1, %2, %cst {dimension_numbers = #tpu.dot_dimension_numbers<[1], [0], [0], [1], [0, 0, 1, 1], [], []>} : vector<32x128xbf16>, vector<128x128xbf16>, vector<32x128xf32> -> vector<32x128xf32>
    %c0_3 = arith.constant 0 : index
    %c0_4 = arith.constant 0 : index
    %4 = vector.load %arg3[%c0_3, %c0_4] : memref<32x128xf32, #tpu.memory_space<vmem>>, vector<32x128xf32>
    tpu.vector_store %arg3[%c0_3, %c0_4], %3 {strides = array<i32>} : memref<32x128xf32, #tpu.memory_space<vmem>>, vector<32x128xf32>,
    %cst_5 = arith.constant dense<0.000000e+00> : vector<128xf32>
    %5 = vector.multi_reduction <add>, %3, %cst_5 [0] : vector<32x128xf32> to vector<128xf32>
    %6 = vector.shape_cast %5 : vector<128xf32> to vector<1x128xf32>
    %7 = arith.mulf %3, %3 : vector<32x128xf32>
    %cst_6 = arith.constant dense<0.000000e+00> : vector<128xf32>
    %8 = vector.multi_reduction <add>, %7, %cst_6 [0] : vector<32x128xf32> to vector<128xf32>
    %9 = vector.shape_cast %8 : vector<128xf32> to vector<1x128xf32>
    %cst_7 = arith.constant 0.000000e+00 : f32
    %10 = vector.broadcast %cst_7 : f32 to vector<6x128xf32>
    %11 = tpu.concatenate %6, %9, %10 in 0 : vector<1x128xf32>, vector<1x128xf32>, vector<6x128xf32> -> vector<8x128xf32>
    %c0_8 = arith.constant 0 : index
    %c0_9 = arith.constant 0 : index
    %c0_10 = arith.constant 0 : index
    %12 = vector.load %arg4[%c0_8, %c0_9, %c0_10] : memref<1x8x128xf32, #tpu.memory_space<vmem>>, vector<1x8x128xf32>
    %13 = vector.shape_cast %12 : vector<1x8x128xf32> to vector<8x128xf32>
    %14 = vector.shape_cast %11 : vector<8x128xf32> to vector<1x8x128xf32>
    tpu.vector_store %arg4[%c0_8, %c0_9, %c0_10], %14 {strides = array<i32>} : memref<1x8x128xf32, #tpu.memory_space<vmem>>, vector<1x8x128xf32>,
    return
  }
  func.func @transform_0(%arg0: i32) -> (i32, i32) {
    %c0_i32 = arith.constant 0 : i32
    %c0_i32_0 = arith.constant 0 : i32
    return %arg0, %c0_i32 : i32, i32
  }
  func.func @transform_1(%arg0: i32) -> (i32, i32) {
    %c0_i32 = arith.constant 0 : i32
    %c0_i32_0 = arith.constant 0 : i32
    %c0_i32_1 = arith.constant 0 : i32
    return %c0_i32, %c0_i32_0 : i32, i32
  }
  func.func @transform_2(%arg0: i32) -> (i32, i32) {
    %c0_i32 = arith.constant 0 : i32
    %c0_i32_0 = arith.constant 0 : i32
    return %arg0, %c0_i32 : i32, i32
  }
  func.func @transform_3(%arg0: i32) -> (i32, i32, i32) {
    %c0_i32 = arith.constant 0 : i32
    %c0_i32_0 = arith.constant 0 : i32
    %c0_i32_1 = arith.constant 0 : i32
    return %arg0, %c0_i32, %c0_i32_0 : i32, i32, i32
  }
}

</mosaic_0001>

<bundles_post_ra>
// kernel: tpu_custom_call.1
= control target key start
LH: loop header
LB: loop body
LE: loop exit
PB: predicated region body
PF: predicated region fallthrough
CT: control target
= control target key end

     0   :  { %9 = vsyncpa [#allocation3], 0  ;;  %s1075_s0 = inlined_call_operand.hbm [shape: f32[128,128], index: 0, kind: input, shape index: {}]   ;;  %s1076_s1 = inlined_call_operand.hbm [shape: bf16[128,128], index: 1, kind: input, shape index: {}]   ;;  %s1077_s2 = inlined_call_operand.hbm [shape: f32[128,128], index: 2, kind: output, shape index: {0}]   ;;  %s1078_s3 = inlined_call_operand.hbm [shape: f32[4,8,128], index: 3, kind: output, shape index: {1}]  }
   0x1   :  { %11 = vsyncpa [#allocation3 + $0x1], 0 }
   0x2   :  { %12 = vsyncpa [#allocation6], 0 }
   0x3   :  { %13 = vsyncpa [#allocation4], 0 }
   0x4   :  { %15 = vsyncpa [#allocation4 + $0x1], 0 }
   0x5   :  { %16 = vsyncpa [#allocation9], 0 }
   0x6   :  { %18 = vsyncpa [#allocation9 + $0x1], 0  ;;  %s842_s12 = smov 0   ;;  %s844_s13 = smov 0  }
   0x7   :  { %s846_s14 = smov 0   ;;  %s848_s15 = smov 0  }
   0x8 LB: > { %s863_s16 = sadd.s32 4294967295, %s810_s15   ;;  %s515_s17 = sadd.s32 4294967294, %s810_s15   ;;  %s810_s15 = sphi %s848_s15, %s1097_s15   ;;  %s806_s14 = sphi %s846_s14, %s1096_s14   ;;  %s802_s13 = sphi %s844_s13, %s1095_s13   ;;  %s798_s12 = sphi %s842_s12, %s1094_s12  }
   0x9   : > { %p44_p0 = scmp.ne.s32.totalorder %s802_s13, %s798_s12  ;;  %p1079_p1 = scmp.eq.s32.totalorder %s863_s16, 0 }
   0xa   : > { %p95_p3 = scmp.eq.s32.totalorder %s515_s17, 3  ;;  %p516_p5 = scmp.ge.s32.totalorder %s810_s15, 1 }
   0xb   : > { %p872_p4 = por %p1079_p1, %p44_p0  ;;  %p128_p7 = scmp.lt.s32.totalorder %s810_s15, 5 }
   0xc   : > { %p877_p6 = por %p95_p3, %p44_p0  ;;  %s812_s21 = smov [#allocation5]  }
   0xd   : > { %s1082_s18 = scalar_select %p872_p4, 1, 0 }
   0xe   : > { %s1083_s19 = scalar_select %p877_p6, 1, 0 }
   0xf   : > { %p882_p8 = pnand %p516_p5, %p128_p7  ;;  %s140_s22 = sshll.u32 %s812_s21, 4  ;;  %s141_s22 = int_to_ptr.vmem [resolvable:$true] %s140_s22 }
  0x10   : > { %s895_s24 = sadd.s32 1, %s810_s15   ;;  %s31_s25 = sadd.s32 1, %s806_s14 }
  0x11   : > { %s1084_s20 = scalar_select %p882_p8, 1, 0 }
  0x12   : > { %p584_p9 = pneg %p882_p8  ;;  %s28_s26 = ssub.s32 %s810_s15, %s895_s24 }
  0x13   : > { %s650_s29 = scalar_lea.hbm %s1076_s1, 1024 }
  0x14   : > { %p890_p10 = pnand %p584_p9, %p1079_p1  ;;  %p651_p11 = scmp.ne.s32.totalorder %s1076_s1, %s650_s29 }
  0x15   : > { %p657_p3 = scmp.lt.u32.totalorder %s650_s29, %s1076_s1 }
  0x16   : > { %p652_p12 = pneg %p890_p10 }
  0x18   : > { %p653_p13 = pnand %p652_p12, %p651_p11 }
  0x1a   : > { %p654_p0 = pneg %p653_p13 }
  0x1c   : > { %p659_p5 = pnand %p657_p3, %p654_p0 }
  0x1e   : > { %662 = shalt.err (!%p659_p5)
}
  0x1f   : > { %s663_s7 = scalar_lea.vmem %s141_s22, 1024  ;;  %p671_p2 = scmp.lt.s32.totalorder %s141_s22, %s141_s22 }
  0x20   : > { %p664_p7 = scmp.ne.s32.totalorder %s141_s22, %s663_s7  ;;  %p672_p6 = scmp.lt.s32.totalorder %s663_s7, %s663_s7 }
  0x22   : > { %p666_p9 = pnand %p664_p7, %p652_p12  ;;  %p673_p4 = por %p672_p6, %p671_p2 }
  0x24   : > { %p667_p1 = pneg %p666_p9 }
  0x26   : > { %p674_p8 = pnand %p673_p4, %p667_p1 }
  0x28   : > { %677 = shalt.err (!%p674_p8)
}
  0x29   : > { %s813_s8 = smov 64   ;;  %s814_s9 = smov 4  }
  0x2a   : > { %587 = dma.hbm_to_vmem [thread:$0]  (!%p890_p10), %s1076_s1, 1024, %s141_s22, [#allocation6], %s813_s8, %s813_s8, %s814_s9  }
  0x2b   : > { %p29_p11 = scmp.eq.s32.totalorder %s28_s26, 0  ;;  %p38_p2 = scmp.ne.s32.totalorder %s806_s14, %s802_s13 }
  0x2c   : > { %p39_p1 = scmp.eq.s32.totalorder %s810_s15, 0  ;;  %p600_p4 = scmp.lt.s32.totalorder %s810_s15, 4 }
  0x2d   : > { %s921_s17 = scalar_select %p29_p11, %s806_s14, %s31_s25  }
  0x2e   : > { %p40_p6 = por %p39_p1, %p38_p2  ;;  %p1086_p8 = scmp.eq.s32.totalorder %s863_s16, 3 }
  0x2f   : > { %s154_s27 = sand.u32 1, %s806_s14   ;;  %s542_s28 = sshll.u32 %s810_s15, 9 }
  0x30   : > { %p925_p12 = por %p1086_p8, %p38_p2  ;;  %s519_s29 = sshll.u32 %s154_s27, 5 }
  0x31   : > { %s934_s4 = scalar_lea.hbm %s1075_s0, %s542_s28  ;;  %s158_s22 = scalar_lea.vmem [#allocation2], %s519_s29 }
  0x32   : > { %s165_s25 = sshll.u32 %s158_s22, 4  ;;  %p936_p10 = pnand %p600_p4, %p40_p6  ;;  %s940_s25 = int_to_ptr.vmem [resolvable:$true] %s165_s25 }
  0x33   : > { %s942_s5 = scalar_lea.sflag [#allocation3], %s154_s27  ;;  %s678_s6 = scalar_lea.hbm %s934_s4, 512 }
  0x34   : > { %p679_p13 = scmp.ne.s32.totalorder %s934_s4, %s678_s6  ;;  %p680_p0 = pneg %p936_p10 }
  0x35   : > { %s683_s9 = scalar_lea.hbm %s1075_s0, 2048  ;;  %p684_p7 = scmp.lt.u32.totalorder %s934_s4, %s1075_s0 }
  0x36   : > { %p681_p3 = pnand %p680_p0, %p679_p13  ;;  %p685_p9 = scmp.lt.u32.totalorder %s683_s9, %s678_s6 }
  0x37   : > { %p687_p2 = scmp.lt.u32.totalorder %s678_s6, %s934_s4 }
  0x38   : > { %p682_p5 = pneg %p681_p3  ;;  %p686_p11 = por %p685_p9, %p684_p7 }
  0x3a   : > { %p688_p1 = por %p687_p2, %p686_p11 }
  0x3c   : > { %p689_p4 = pnand %p688_p1, %p682_p5 }
  0x3e   : > { %692 = shalt.err (!%p689_p4)
}
  0x3f   : > { %s693_s27 = scalar_lea.vmem %s940_s25, 512  ;;  %s815_s28 = smov [#allocation2]  }
  0x40   : > { %p694_p6 = scmp.ne.s32.totalorder %s940_s25, %s693_s27  ;;  %s698_s29 = sshll.u32 %s815_s28, 4  ;;  %s699_s29 = int_to_ptr.vmem [resolvable:$false] %s698_s29 }
  0x41   : > { %s700_s23 = scalar_lea.vmem %s699_s29, 1024  ;;  %p701_p3 = scmp.lt.s32.totalorder %s940_s25, %s699_s29 }
  0x42   : > { %p696_p8 = pnand %p694_p6, %p680_p0  ;;  %p702_p7 = scmp.lt.s32.totalorder %s700_s23, %s693_s27 }
  0x44   : > { %p697_p13 = pneg %p696_p8  ;;  %p703_p9 = por %p702_p7, %p701_p3 }
  0x46   : > { %p704_p11 = pnand %p703_p9, %p697_p13 }
  0x48   : > { %707 = shalt.err (!%p704_p11)
}
  0x49   : > { %s816_s30 = smov 128   ;;  %s817_s22 = smov 8  }
  0x4a   : > { %591 = dma.hbm_to_vmem [thread:$0]  (!%p936_p10), %s934_s4, 512, %s940_s25, %s942_s5, %s816_s30, %s816_s30, %s817_s22  }
  0x4b   : > { %p1089_p0 = scmp.ne.s32.totalorder %s1084_s20, 0 }
  0x4c   : > { %s973_s6 = sand.u32 (!%p1089_p0), 1, %s802_s13   ;;  %p1090_p5 = scmp.ne.s32.totalorder (!%p1089_p0), %s1082_s18, 0 }
  0x4d   : > { %177 = sbr.rel (%p1089_p0) target bundleno = 383 (0x17f), region = 28  ;;  %s523_s7 = sshll.u32 (!%p1089_p0), %s973_s6, 5 }
  0x4e   : > { %s180_s8 = scalar_lea.sflag (!%p1089_p0), [#allocation3], %s973_s6  ;;  %s979_s9 = scalar_lea.vmem (!%p1089_p0), [#allocation2], %s523_s7 }
  0x54   : > { %781 = dma.done.wait (%p1090_p5), %s180_s8, 512  }
  0x55   : > { %783 = vsyncadd (%p1090_p5), %s180_s8, 4294966784  ;;  %p1091_p10 = scmp.eq.s32.totalorder %s863_s16, 0 }
  0x57   : > { %785 = dma.done.wait (%p1091_p10), [#allocation6], 1024   ;;  %p1092_p2 = pmov %p1091_p10 }
  0x58   : > { %v642_v0 = vld [vmem:[#allocation5] sm:$0xff]   ;;  %v643_v1 = vld [vmem:[#allocation5 + $0x8] sm:$0xff]   ;;  %v644_v2 = vld [vmem:[#allocation5 + $0x10] sm:$0xff]   ;;  %s207_s18 = scalar_lea.vmem [#allocation7], %s523_s7  ;;  %s543_s4 = sshll.u32 %s863_s16, 9 }
  0x59   : > { %787 = vsyncadd (%p1092_p2), [#allocation6], 4294966272  ;;  %554 = vmatprep.subr.bf16.mxu0 %v642_v0  ;;  %v645_v3 = vld [vmem:[#allocation5 + $0x18] sm:$0xff]   ;;  %v218_v4 = vld [vmem:[%s979_s9] sm:$0xff]  ;;  %s387_s20 = sshll.u32 %s207_s18, 4  ;;  %s1001_s5 = scalar_lea.hbm %s1077_s2, %s543_s4  ;;  %s996_s20 = int_to_ptr.vmem [resolvable:$true] %s387_s20 }
  0x5a   : > { %555 = vmatpush3.bf16.msra.mxu0 %v642_v0  ;;  %v219_v5 = vld [vmem:[%s979_s9 + $0x8] sm:$0xff]  ;;  %v646_v7 = vld [vmem:[#allocation5 + $0x20] sm:$0xff]   ;;  %v648_v9 = vld [vmem:[#allocation5 + $0x30] sm:$0xff]   ;;  %s369_s10 = scalar_lea.sflag [#allocation4], %s973_s6  ;;  %s708_s11 = scalar_lea.vmem %s996_s20, 512 }
  0x5b   : > { %556 = vmatprep.subr.bf16.mxu0 %v643_v1  ;;  %v222_v6 = vpack.c.bf16 %v219_v5, %v218_v4  ;;  %v647_v8 = vld [vmem:[#allocation5 + $0x28] sm:$0xff]   ;;  %v649_v10 = vld [vmem:[#allocation5 + $0x38] sm:$0xff]   ;;  %v220_v11 = vld [vmem:[%s979_s9 + $0x10] sm:$0xff]  ;;  %p709_p1 = scmp.ne.s32.totalorder %s996_s20, %s708_s11  ;;  %s818_s27 = smov [#allocation7]  }
  0x5c   : > { %v221_v12 = vld [vmem:[%s979_s9 + $0x18] sm:$0xff]  ;;  %s712_s28 = sshll.u32 %s818_s27, 4  ;;  %s713_s28 = int_to_ptr.vmem [resolvable:$false] %s712_s28 }
  0x5d   : > { %570 = vmatprep.mubr.bf16.mxu0 %v222_v6  ;;  %v223_v13 = vpack.c.bf16 %v221_v12, %v220_v11  ;;  %p710_p4 = pnand %p709_p1, %p925_p12  ;;  %s714_s29 = scalar_lea.vmem %s713_s28, 1024 }
  0x5e   : > { %557 = vmatpush3.bf16.msra.mxu0 %v643_v1  ;;  %p715_p8 = scmp.lt.s32.totalorder %s996_s20, %s713_s28  ;;  %p716_p13 = scmp.lt.s32.totalorder %s714_s29, %s708_s11 }
  0x5f   : > { %558 = vmatprep.subr.bf16.mxu0 %v644_v2  ;;  %p711_p6 = pneg %p710_p4 }
  0x60   : > { %p717_p3 = por %p716_p13, %p715_p8 }
  0x62   : > { %559 = vmatpush3.bf16.msra.mxu0 %v644_v2  ;;  %p718_p7 = pnand %p717_p3, %p711_p6 }
  0x63   : > { %560 = vmatprep.subr.bf16.mxu0 %v645_v3 }
  0x66   : > { %561 = vmatpush3.bf16.msra.mxu0 %v645_v3 }
  0x67   : > { %562 = vmatprep.subr.bf16.mxu0 %v646_v7 }
  0x6a   : > { %563 = vmatpush3.bf16.msra.mxu0 %v646_v7 }
  0x6b   : > { %564 = vmatprep.subr.bf16.mxu0 %v647_v8 }
  0x6e   : > { %565 = vmatpush3.bf16.msra.mxu0 %v647_v8 }
  0x6f   : > { %566 = vmatprep.subr.bf16.mxu0 %v648_v9 }
  0x72   : > { %567 = vmatpush3.bf16.msra.mxu0 %v648_v9 }
  0x73   : > { %568 = vmatprep.subr.bf16.mxu0 %v649_v10 }
  0x76   : > { %569 = vmatpush3.bf16.msra.mxu0 %v649_v10 }
  0x79   : > { %571 = vmatmul.mubr.bf16.vlgmr.msra.gmra.mrb[0].mxu0 %v223_v13 }
 0x14c   : > { %v572_v14 = vpop.f32.mrb[0].mxu0 }
 0x14d   : > { %339 = vst [vmem:[%s207_s18 + $0x10] sm:$0xff] %v572_v14  ;;  %v322_v15 = vpop.f32.mrb[1].mxu0 }
 0x14e   : > { %337 = vst [vmem:[%s207_s18] sm:$0xff] %v322_v15  ;;  %v573_v16 = vpop.f32.mrb[2].mxu0  ;;  %v350_v18 = vmul.f32 %v322_v15, %v322_v15 }
 0x14f   : > { %340 = vst [vmem:[%s207_s18 + $0x18] sm:$0xff] %v573_v16  ;;  %v325_v17 = vpop.f32.mrb[3].mxu0 }
 0x150   : > { %338 = vst [vmem:[%s207_s18 + $0x8] sm:$0xff] %v325_v17  ;;  %v341_v19 = vadd.f32 %v325_v17, %v322_v15  ;;  %v351_v20 = vmul.f32 %v325_v17, %v325_v17 }
 0x151   : > { %721 = shalt.err (!%p718_p7)
}
 0x152   : > { %s722_s23 = scalar_lea.hbm %s1001_s5, 512  ;;  %s726_s7 = scalar_lea.hbm %s1077_s2, 2048 }
 0x153   : > { %p723_p9 = scmp.ne.s32.totalorder %s1001_s5, %s722_s23  ;;  %p727_p5 = scmp.lt.u32.totalorder %s1001_s5, %s1077_s2 }
 0x154   : > { %p728_p10 = scmp.lt.u32.totalorder %s726_s7, %s722_s23  ;;  %p730_p1 = scmp.lt.u32.totalorder %s722_s23, %s1001_s5 }
 0x155   : > { %p724_p11 = pnand %p723_p9, %p925_p12 }
 0x156   : > { %p729_p2 = por %p728_p10, %p727_p5 }
 0x157   : > { %p725_p0 = pneg %p724_p11 }
 0x158   : > { %p731_p4 = por %p730_p1, %p729_p2 }
 0x15a   : > { %p732_p6 = pnand %p731_p4, %p725_p0 }
 0x15c   : > { %735 = shalt.err (!%p732_p6)
}
 0x15d   : > { %s819_s18 = smov 128   ;;  %s820_s4 = smov 8   ;;  %v352_v21 = vmul.f32 %v572_v14, %v572_v14  ;;  %v342_v22 = vadd.f32 %v572_v14, %v341_v19  ;;  %v354_v23 = vadd.f32 %v351_v20, %v350_v18  ;;  %v353_v24 = vmul.f32 %v573_v16, %v573_v16 }
 0x15e   : > { %580 = dma.vmem_to_hbm [thread:$0]  (%p925_p12), %s996_s20, 512, %s1001_s5, %s369_s10, %s819_s18, %s819_s18, %s820_s4   ;;  %vm363_vm0 = vcmask 1040384   ;;  %vm365_vm1 = vcmask 1041408  }
 0x15f   : > { %v343_v25 = vadd.f32 %v573_v16, %v342_v22  ;;  %v355_v26 = vadd.f32 %v354_v23, %v352_v21  ;;  %s526_s25 = sshll.u32 %s973_s6, 3  ;;  %s539_s20 = sshll.u32 %s863_s16, 7 }
 0x160   : > { %s214_s26 = scalar_lea.vmem [#allocation8], %s526_s25  ;;  %s1032_s27 = scalar_lea.hbm %s1078_s3, %s539_s20 }
 0x161   : > { %v344_v27 = vrot.slane %v343_v25, 4  ;;  %v356_v28 = vadd.f32 %v355_v26, %v353_v24  ;;  %s403_s5 = sshll.u32 %s214_s26, 4  ;;  %s374_s28 = scalar_lea.sflag [#allocation9], %s973_s6  ;;  %s1034_s5 = int_to_ptr.vmem [resolvable:$true] %s403_s5 }
 0x162   : > { %s736_s16 = scalar_lea.vmem %s1034_s5, 128  ;;  %s821_s29 = smov [#allocation8]  }
 0x163   : > { %v345_v29 = vadd.f32 %v344_v27, %v343_v25  ;;  %v357_v30 = vrot.slane %v356_v28, 4  ;;  %p737_p8 = scmp.ne.s32.totalorder %s1034_s5, %s736_s16  ;;  %s740_s23 = sshll.u32 %s821_s29, 4  ;;  %s741_s23 = int_to_ptr.vmem [resolvable:$false] %s740_s23 }
 0x164   : > { %s742_s30 = scalar_lea.vmem %s741_s23, 256  ;;  %p743_p7 = scmp.lt.s32.totalorder %s1034_s5, %s741_s23 }
 0x165   : > { %v346_v31 = vrot.slane %v345_v29, 2  ;;  %v358_v32 = vadd.f32 %v357_v30, %v356_v28  ;;  %p738_p13 = pnand %p737_p8, %p925_p12  ;;  %p744_p9 = scmp.lt.s32.totalorder %s742_s30, %s736_s16 }
 0x167   : > { %v347_v33 = vadd.f32 %v346_v31, %v345_v29  ;;  %v359_v34 = vrot.slane %v358_v32, 2  ;;  %p739_p3 = pneg %p738_p13  ;;  %p745_p11 = por %p744_p9, %p743_p7 }
 0x169   : > { %v348_v35 = vrot.slane %v347_v33, 1  ;;  %v360_v36 = vadd.f32 %v359_v34, %v358_v32  ;;  %p746_p0 = pnand %p745_p11, %p739_p3 }
 0x16b   : > { %v361_v37 = vrot.slane %v360_v36, 1  ;;  %v349_v38 = vadd.f32 %v348_v35, %v347_v33 }
 0x16d   : > { %v362_v39 = vadd.f32 %v361_v37, %v360_v36 }
 0x16f   : > { %v364_v40 = vsel %vm363_vm0, %v349_v38, %v362_v39 }
 0x170   : > { %v366_v41 = vsel %vm365_vm1, %v364_v40, 0.0 }
 0x171   : > { %367 = vst [vmem:[%s214_s26] sm:$0xff] %v366_v41 }
 0x172   : > { %749 = shalt.err (!%p746_p0)
}
 0x173   : > { %s750_s6 = scalar_lea.hbm %s1032_s27, 128  ;;  %s754_s8 = scalar_lea.hbm %s1078_s3, 512 }
 0x174   : > { %p751_p5 = scmp.ne.s32.totalorder %s1032_s27, %s750_s6  ;;  %p755_p1 = scmp.lt.u32.totalorder %s1032_s27, %s1078_s3 }
 0x175   : > { %p756_p4 = scmp.lt.u32.totalorder %s754_s8, %s750_s6  ;;  %p758_p8 = scmp.lt.u32.totalorder %s750_s6, %s1032_s27 }
 0x176   : > { %p752_p10 = pnand %p751_p5, %p925_p12 }
 0x177   : > { %p757_p6 = por %p756_p4, %p755_p1 }
 0x178   : > { %p753_p2 = pneg %p752_p10 }
 0x179   : > { %p759_p13 = por %p758_p8, %p757_p6 }
 0x17b   : > { %p760_p3 = pnand %p759_p13, %p753_p2 }
 0x17d   : > { %763 = shalt.err (!%p760_p3)
}
 0x17e   : > { %581 = dma.vmem_to_hbm [thread:$0]  (%p925_p12), %s1034_s5, 128, %s1032_s27, %s374_s28  }
 0x17f PF: > { %p602_p7 = scmp.ge.s32.totalorder %s810_s15, 2  ;;  %s415_s4 = sand.u32 1, %s798_s12  }
 0x180   : > { %p1093_p9 = scmp.ne.s32.totalorder %s1083_s19, 0  ;;  %s416_s25 = scalar_lea.sflag [#allocation4], %s415_s4 }
 0x182   : > { %p593_p11 = pnand %p602_p7, %p1093_p9 }
 0x184   : > { %789 = dma.done.wait (!%p593_p11), %s416_s25, 512  }
 0x185   : > { %791 = vsyncadd (!%p593_p11), %s416_s25, 4294966784  ;;  %s425_s20 = scalar_lea.sflag [#allocation9], %s415_s4 }
 0x186   : > { %793 = dma.done.wait (!%p593_p11), %s425_s20, 128  }
 0x187   : > { %795 = vsyncadd (!%p593_p11), %s425_s20, 4294967168  ;;  %p21_p12 = scmp.ge.s32.totalorder %s895_s24, 6   ;;  %s1094_s12 = smov %s802_s13 }
 0x188   : > { %s1095_s13 = smov %s806_s14  ;;  %s1096_s14 = smov %s921_s17 }
 0x189   : > { %s1097_s15 = smov %s895_s24  ;;  %23 = sbr.rel (!%p21_p12) target bundleno = 8 (0x8), region = 94 }
 0x190   :  { %430 = vsyncpa [#allocation3], 1 }
 0x191   :  { %432 = vsyncpa [#allocation3 + $0x1], 1 }
 0x192   :  { %433 = vsyncpa [#allocation6], 1 }
 0x193   :  { %434 = vsyncpa [#allocation4], 1 }
 0x194   :  { %436 = vsyncpa [#allocation4 + $0x1], 1 }
 0x195   :  { %437 = vsyncpa [#allocation9], 1 }
 0x196   :  { %439 = vsyncpa [#allocation9 + $0x1], 1 }

</bundles_post_ra>
